<compile_context>
chip_gen: v7x
topology: tpu7x:2x2x1
jax: 0.10.0
libtpu: 0.0.40
codegen_flags: <defaults>
</compile_context>

<pallas_src>
import functools
import math

import jax
import jax.numpy as jnp
from jax.experimental import pallas as pl
from jax.experimental.pallas import tpu as pltpu

SECONDS_IN_A_DAY = 60 * 60 * 24
_DEFAULT_TILE_N = 8192  # original-node rows per grid step; ~1 MiB f32 output tile


def _round_up(x: int, m: int) -> int:
    return ((x + m - 1) // m) * m


def _fused_kernel(tid_ref, rel_ref, scale_ref, phase_ref, w_ref, b_ref, out_ref,
                  *, reps):
    """Fused PositionalEncoding + Linear for one row tile of one node type.

    tid_ref   : SMEM [num_tiles] int32   per-tile node-type id (index_map only)
    rel_ref   : VMEM [TILE_P, PACK] f32  raw (seed - time) seconds, PACK nodes / row
    scale_ref : VMEM [1, LW]        f32  tiled (freq / 86400) per node type
    phase_ref : VMEM [1, LW]        f32  0 for sin lanes, pi/2 for cos lanes
    w_ref     : VMEM [LW, LW]       f32  block-diagonal packed Linear weight
    b_ref     : VMEM [1, LW]        f32  packed Linear bias
    out_ref   : VMEM [TILE_P, LW]   f32  lane-dense packed output
    """
    del tid_ref  # only consumed by the index_maps
    rel = rel_ref[...]                                    # [TILE_P, PACK]
    # Lane-expand each node's rel_time across its C output lanes.
    rel_rep = jnp.repeat(rel, reps, axis=1)               # [TILE_P, LW]
    # sin lanes get phase 0, cos lanes get pi/2  (cos(x) == sin(x + pi/2)).
    arg = rel_rep * scale_ref[...] + phase_ref[...]       # [TILE_P, LW]  (VPU)
    trig = jnp.sin(arg)                                   # single lane-dense EUP pass
    out = jnp.dot(trig, w_ref[...],
                  preferred_element_type=jnp.float32,
                  precision=jax.lax.Precision.HIGHEST)    # [TILE_P, LW] on the MXU
    out_ref[...] = (out + b_ref[...]).astype(out_ref.dtype)


def hetero_temporal_encoder_forward(seed_time, time_dict, batch_dict, params,
                                    max_tile_n: int = _DEFAULT_TILE_N):
    """JAX/Pallas equivalent of HeteroTemporalEncoder.forward.

    seed_time : [B]            seed timestamps (seconds)
    time_dict : {nt: [N_nt]}   node timestamps (seconds)
    batch_dict: {nt: [N_nt]}   int32 index into seed_time
    params    : {nt: (freq [C//2], W_T [C, C] (= torch W transposed), b [C])}
    """
    node_types = list(time_dict.keys())
    channels = params[node_types[0]][1].shape[0]
    assert channels % 2 == 0, "PositionalEncoding requires an even channel count"
    half = channels // 2
    pack = 128 // channels if (channels <= 128 and 128 % channels == 0) else 1
    lw = pack * channels  # packed lane width (128 when channels divides 128)

    # ---- plain-JAX glue: gather + subtract (in native dtype, then f32 cast) ----
    # The /86400 division is folded into the per-type scale below.
    rel_list = []
    for nt in node_types:
        diff = seed_time[batch_dict[nt]] - time_dict[nt]   # subtract BEFORE f32 cast
        rel_list.append(diff.astype(jnp.float32))

    # ---- pick a tile size (rows of original nodes) ----
    n_max = max(int(r.shape[0]) for r in rel_list)
    tile_n = int(min(max_tile_n, _round_up(max(n_max, 1), 8 * pack)))
    tile_n = _round_up(tile_n, 8 * pack)
    tile_p = tile_n // pack                                # packed rows per tile

    # ---- pad + pack rel_time per node type, build the per-tile type-id table ----
    rel_blocks, tile_type_ids, packed_rows = [], [], []
    for t_idx, rel in enumerate(rel_list):
        n = int(rel.shape[0])
        n_pad = _round_up(max(n, 1), tile_n)
        rel_p = jnp.pad(rel, (0, n_pad - n))
        rel_blocks.append(rel_p.reshape(n_pad // pack, pack))
        tile_type_ids.extend([t_idx] * (n_pad // tile_n))
        packed_rows.append(n_pad // pack)
    rel_all = jnp.concatenate(rel_blocks, axis=0)          # [R_total, PACK]
    type_ids = jnp.asarray(tile_type_ids, dtype=jnp.int32)  # [num_tiles]
    num_tiles = int(type_ids.shape[0])

    # ---- pack parameters once in the wrapper ----
    inv_day = jnp.float32(1.0 / SECONDS_IN_A_DAY)
    scale_rows, w_rows, b_rows = [], [], []
    for nt in node_types:
        freq, w_t, b = params[nt]
        freq = freq.astype(jnp.float32) * inv_day          # fold /86400 into scale
        w_t = w_t.astype(jnp.float32)
        b = b.astype(jnp.float32)
        scale_rows.append(jnp.tile(freq, 2 * pack))                     # [LW]
        w_rows.append(jnp.kron(jnp.eye(pack, dtype=jnp.float32), w_t))  # [LW, LW]
        b_rows.append(jnp.tile(b, pack))                                # [LW]
    scale_all = jnp.stack(scale_rows)[:, None, :]          # [T, 1, LW]
    w_all = jnp.stack(w_rows)                              # [T, LW, LW]
    b_all = jnp.stack(b_rows)[:, None, :]                  # [T, 1, LW]
    phase = jnp.tile(
        jnp.concatenate([jnp.zeros((half,), jnp.float32),
                         jnp.full((half,), jnp.float32(math.pi / 2))]),
        pack)[None, :]                                     # [1, LW]

    out_packed = pl.pallas_call(
        functools.partial(_fused_kernel, reps=lw // pack),
        out_shape=jax.ShapeDtypeStruct((rel_all.shape[0], lw), jnp.float32),
        grid_spec=pltpu.PrefetchScalarGridSpec(
            num_scalar_prefetch=1,
            grid=(num_tiles,),
            in_specs=[
                pl.BlockSpec((tile_p, pack), lambda i, tid: (i, 0)),          # rel
                pl.BlockSpec((None, 1, lw), lambda i, tid: (tid[i], 0, 0)),   # scale
                pl.BlockSpec((1, lw), lambda i, tid: (0, 0)),                 # phase
                pl.BlockSpec((None, lw, lw), lambda i, tid: (tid[i], 0, 0)),  # W
                pl.BlockSpec((None, 1, lw), lambda i, tid: (tid[i], 0, 0)),   # b
            ],
            out_specs=pl.BlockSpec((tile_p, lw), lambda i, tid: (i, 0)),
        ),
        compiler_params=pltpu.CompilerParams(
            dimension_semantics=("parallel",)),
    )(type_ids, rel_all, scale_all, phase, w_all, b_all)

    # ---- unpack: row-major view [R, LW] == [R*PACK, C], then drop padding ----
    out_dict = {}
    offset = 0
    for nt, rel, rows in zip(node_types, rel_list, packed_rows):
        n = int(rel.shape[0])
        blk = out_packed[offset:offset + rows]
        out_dict[nt] = blk.reshape(rows * pack, channels)[:n]
        offset += rows
    return out_dict


def make_params(node_types, channels, key):
    """Deterministic synthetic parameters matching the module's __init__ shapes."""
    params = {}
    half = channels // 2
    # PyG PositionalEncoding: frequency = torch.logspace(0, 1, C//2, base=1e-4)
    exponents = jnp.linspace(0.0, 1.0, half)
    freq = jnp.power(jnp.float32(1e-4), exponents).astype(jnp.float32)
    for node_type in node_types:
        key, kw, kb = jax.random.split(key, 3)
        bound = 1.0 / math.sqrt(channels)
        w = jax.random.uniform(kw, (channels, channels), jnp.float32, -bound, bound)
        b = jax.random.uniform(kb, (channels,), jnp.float32, -bound, bound)
        # store W transposed: kernel does pe @ W_T == pe @ W.T of the torch layout
        params[node_type] = (freq, w.T, b)
    return params


def reference_forward(seed_time, time_dict, batch_dict, params):
    """Pure-JAX reference of the exact torch math, for correctness checking."""
    out = {}
    for nt, time in time_dict.items():
        rel = (seed_time[batch_dict[nt]] - time).astype(jnp.float32) / SECONDS_IN_A_DAY
        freq, w_t, b = params[nt]
        arg = rel[:, None] * freq[None, :]
        pe = jnp.concatenate([jnp.sin(arg), jnp.cos(arg)], axis=-1)
        out[nt] = jnp.dot(pe, w_t, precision=jax.lax.Precision.HIGHEST) + b[None, :]
    return out


if __name__ == "__main__":
    key = jax.random.PRNGKey(0)
    node_types = ["user", "item"]
    channels = 32
    batch_size = 4
    num_nodes = {"user": 16, "item": 24}

    key, k_seed = jax.random.split(key)
    seed_time = jax.random.uniform(k_seed, (batch_size,), jnp.float32, 1.0e6, 2.0e6)

    time_dict = {}
    batch_dict = {}
    for nt in node_types:
        key, kt, kb = jax.random.split(key, 3)
        time_dict[nt] = jax.random.uniform(kt, (num_nodes[nt],), jnp.float32, 0.0, 1.0e6)
        batch_dict[nt] = jax.random.randint(kb, (num_nodes[nt],), 0, batch_size, jnp.int32)

    params = make_params(node_types, channels, key)

    out_dict = hetero_temporal_encoder_forward(seed_time, time_dict, batch_dict, params)
    for v in out_dict.values():
        jax.block_until_ready(v)

    ref_dict = reference_forward(seed_time, time_dict, batch_dict, params)
    for nt in node_types:
        assert out_dict[nt].shape == (num_nodes[nt], channels)
        assert jnp.allclose(out_dict[nt], ref_dict[nt], atol=1e-3, rtol=1e-3), nt

    print("KERNEL_OK")
</pallas_src>

<mosaic_0001>
module attributes {stable_mosaic.version = 11 : i64} {
  func.func @_fused_kernel(%arg0: i32, %arg1: memref<2xi32, #tpu.memory_space<smem>>, %arg2: memref<8x4xf32, #tpu.memory_space<vmem>>, %arg3: memref<1x1x128xf32, #tpu.memory_space<vmem>>, %arg4: memref<1x128xf32, #tpu.memory_space<vmem>>, %arg5: memref<1x128x128xf32, #tpu.memory_space<vmem>>, %arg6: memref<1x1x128xf32, #tpu.memory_space<vmem>>, %arg7: memref<8x128xf32, #tpu.memory_space<vmem>>) attributes {dimension_semantics = [#tpu.dimension_semantics<parallel>], iteration_bounds = array<i64: 2>, scalar_prefetch = 1 : i64, scratch_operands = 0 : i64, tpu.core_type = #tpu.core_type<tc>, window_params = [{transform_indices = @transform_0, window_bounds = array<i64: 8, 4>}, {transform_indices = @transform_1, window_bounds = array<i64: 1, 1, 128>}, {pipeline_mode = #tpu.pipeline_mode<synchronous>, transform_indices = @transform_2, window_bounds = array<i64: 1, 128>}, {transform_indices = @transform_3, window_bounds = array<i64: 1, 128, 128>}, {transform_indices = @transform_4, window_bounds = array<i64: 1, 1, 128>}, {transform_indices = @transform_5, window_bounds = array<i64: 8, 128>}]} {
    %c0 = arith.constant 0 : index
    %c0_0 = arith.constant 0 : index
    %0 = vector.load %arg2[%c0, %c0_0] : memref<8x4xf32, #tpu.memory_space<vmem>>, vector<8x4xf32>
    %1 = vector.shape_cast %0 : vector<8x4xf32> to vector<8x4x1xf32>
    %2 = vector.broadcast %1 : vector<8x4x1xf32> to vector<8x4x32xf32>
    %3 = vector.shape_cast %2 : vector<8x4x32xf32> to vector<8x128xf32>
    %c0_1 = arith.constant 0 : index
    %c0_2 = arith.constant 0 : index
    %c0_3 = arith.constant 0 : index
    %4 = vector.load %arg3[%c0_1, %c0_2, %c0_3] : memref<1x1x128xf32, #tpu.memory_space<vmem>>, vector<1x1x128xf32>
    %5 = vector.shape_cast %4 : vector<1x1x128xf32> to vector<1x128xf32>
    %6 = vector.broadcast %5 : vector<1x128xf32> to vector<8x128xf32>
    %7 = arith.mulf %3, %6 : vector<8x128xf32>
    %c0_4 = arith.constant 0 : index
    %c0_5 = arith.constant 0 : index
    %8 = vector.load %arg4[%c0_4, %c0_5] : memref<1x128xf32, #tpu.memory_space<vmem>>, vector<1x128xf32>
    %9 = vector.broadcast %8 : vector<1x128xf32> to vector<8x128xf32>
    %10 = arith.addf %7, %9 : vector<8x128xf32>
    %11 = math.sin %10 : vector<8x128xf32>
    %c0_6 = arith.constant 0 : index
    %c0_7 = arith.constant 0 : index
    %c0_8 = arith.constant 0 : index
    %12 = vector.load %arg5[%c0_6, %c0_7, %c0_8] : memref<1x128x128xf32, #tpu.memory_space<vmem>>, vector<1x128x128xf32>
    %13 = vector.shape_cast %12 : vector<1x128x128xf32> to vector<128x128xf32>
    %cst = arith.constant dense<0.000000e+00> : vector<8x128xf32>
    %14 = tpu.matmul %11, %13, %cst {dimension_numbers = #tpu.dot_dimension_numbers<[1], [0], [0], [1], [0, 0, 1, 1], [], []>, precision = #tpu.contract_precision<fp32>} : vector<8x128xf32>, vector<128x128xf32>, vector<8x128xf32> -> vector<8x128xf32>
    %c0_9 = arith.constant 0 : index
    %c0_10 = arith.constant 0 : index
    %c0_11 = arith.constant 0 : index
    %15 = vector.load %arg6[%c0_9, %c0_10, %c0_11] : memref<1x1x128xf32, #tpu.memory_space<vmem>>, vector<1x1x128xf32>
    %16 = vector.shape_cast %15 : vector<1x1x128xf32> to vector<1x128xf32>
    %17 = vector.broadcast %16 : vector<1x128xf32> to vector<8x128xf32>
    %18 = arith.addf %14, %17 : vector<8x128xf32>
    %c0_12 = arith.constant 0 : index
    %c0_13 = arith.constant 0 : index
    %19 = vector.load %arg7[%c0_12, %c0_13] : memref<8x128xf32, #tpu.memory_space<vmem>>, vector<8x128xf32>
    tpu.vector_store %arg7[%c0_12, %c0_13], %18 {strides = array<i32>} : memref<8x128xf32, #tpu.memory_space<vmem>>, vector<8x128xf32>,
    return
  }
  func.func @transform_0(%arg0: i32, %arg1: memref<2xi32, #tpu.memory_space<smem>>) -> (i32, i32) {
    %c0_i32 = arith.constant 0 : i32
    %c0_i32_0 = arith.constant 0 : i32
    return %arg0, %c0_i32 : i32, i32
  }
  func.func @transform_1(%arg0: i32, %arg1: memref<2xi32, #tpu.memory_space<smem>>) -> (i32, i32, i32) {
    %0 = arith.index_cast %arg0 : i32 to index
    %1 = memref.load %arg1[%0] : memref<2xi32, #tpu.memory_space<smem>>
    %c0_i32 = arith.constant 0 : i32
    %c0_i32_0 = arith.constant 0 : i32
    %c0_i32_1 = arith.constant 0 : i32
    return %1, %c0_i32, %c0_i32_0 : i32, i32, i32
  }
  func.func @transform_2(%arg0: i32, %arg1: memref<2xi32, #tpu.memory_space<smem>>) -> (i32, i32) {
    %c0_i32 = arith.constant 0 : i32
    %c0_i32_0 = arith.constant 0 : i32
    %c0_i32_1 = arith.constant 0 : i32
    return %c0_i32, %c0_i32_0 : i32, i32
  }
  func.func @transform_3(%arg0: i32, %arg1: memref<2xi32, #tpu.memory_space<smem>>) -> (i32, i32, i32) {
    %0 = arith.index_cast %arg0 : i32 to index
    %1 = memref.load %arg1[%0] : memref<2xi32, #tpu.memory_space<smem>>
    %c0_i32 = arith.constant 0 : i32
    %c0_i32_0 = arith.constant 0 : i32
    %c0_i32_1 = arith.constant 0 : i32
    return %1, %c0_i32, %c0_i32_0 : i32, i32, i32
  }
  func.func @transform_4(%arg0: i32, %arg1: memref<2xi32, #tpu.memory_space<smem>>) -> (i32, i32, i32) {
    %0 = arith.index_cast %arg0 : i32 to index
    %1 = memref.load %arg1[%0] : memref<2xi32, #tpu.memory_space<smem>>
    %c0_i32 = arith.constant 0 : i32
    %c0_i32_0 = arith.constant 0 : i32
    %c0_i32_1 = arith.constant 0 : i32
    return %1, %c0_i32, %c0_i32_0 : i32, i32, i32
  }
  func.func @transform_5(%arg0: i32, %arg1: memref<2xi32, #tpu.memory_space<smem>>) -> (i32, i32) {
    %c0_i32 = arith.constant 0 : i32
    %c0_i32_0 = arith.constant 0 : i32
    return %arg0, %c0_i32 : i32, i32
  }
}

</mosaic_0001>

<bundles_post_ra>
// kernel: tpu_custom_call.1
= control target key start
LH: loop header
LB: loop body
LE: loop exit
PB: predicated region body
PF: predicated region fallthrough
CT: control target
= control target key end

     0   :  { %s2661_s0 = inlined_call_operand.vmem [shape: s32[2], index: 0, kind: input, shape index: {}]   ;;  %s2662_s1 = inlined_call_operand.vmem [shape: f32[16,4], index: 1, kind: input, shape index: {}]   ;;  %s2663_s2 = inlined_call_operand.vmem [shape: f32[2,1,128], index: 2, kind: input, shape index: {}]   ;;  %s2664_s3 = inlined_call_operand.vmem [shape: f32[1,128], index: 3, kind: input, shape index: {}]   ;;  %s2665_s4 = inlined_call_operand.hbm [shape: f32[2,128,128], index: 4, kind: input, shape index: {}]   ;;  %s2666_s5 = inlined_call_operand.vmem [shape: f32[2,1,128], index: 5, kind: input, shape index: {}]   ;;  %s2667_s6 = inlined_call_operand.hbm [shape: f32[16,128], index: 6, kind: output, shape index: {}]  }
   0x1   :  { %s11_s23 = sshll.u32 %s2661_s0, 4  ;;  %s12_s23 = int_to_ptr.vmem [resolvable:$true] %s11_s23 }
   0x2   :  { %s1942_s24 = scalar_lea.vmem %s12_s23, 16  ;;  %p1947_p1 = scmp.lt.s32.totalorder %s12_s23, %s12_s23 }
   0x3   :  { %p1943_p0 = scmp.ne.s32.totalorder %s12_s23, %s1942_s24  ;;  %p1948_p2 = scmp.lt.s32.totalorder %s1942_s24, %s1942_s24 }
   0x5   :  { %p1949_p3 = por %p1948_p2, %p1947_p1 }
   0x7   :  { %p1950_p4 = pnand %p1949_p3, %p1943_p0 }
   0x9   :  { %1953 = shalt.err (!%p1950_p4)  }
   0xa   :  { %s2078_s25 = smov [#allocation3]  }
   0xb   :  { %14 = dma.vmem_to_smem %s12_s23, 16, %s2078_s25, [#allocation2] }
   0xc   :  { %2040 = dma.done.wait [#allocation2], 16 }
   0xd   :  { %2041 = vsyncadd [#allocation2], 4294967280 }
   0xe   :  { %16 = sfence }
   0xf   :  { %17 = vsyncpa [#allocation5], 0 }
  0x10   :  { %19 = vsyncpa [#allocation5 + $0x1], 0 }
  0x11   :  { %20 = vsyncpa [#allocation6], 0 }
  0x12   :  { %22 = vsyncpa [#allocation6 + $0x1], 0  ;;  %s2135_s26 = smov 0   ;;  %s2137_s0 = smov 0  }
  0x13   :  { %s2139_s27 = smov 0   ;;  %s2141_s28 = smov 0  }
  0x14   :  { %s2143_s29 = smov 0   ;;  %s2145_s30 = smov 0  }
  0x15   :  { %s2147_s7 = smov 0  }
  0x16 LB: > { %s2169_s8 = sadd.s32 4294967295, %s2076_s7   ;;  %s1355_s9 = sadd.s32 4294967294, %s2076_s7   ;;  %s2076_s7 = sphi %s2147_s7, %s2719_s7   ;;  %s2072_s30 = sphi %s2145_s30, %s2718_s30   ;;  %s2068_s29 = sphi %s2143_s29, %s2717_s29   ;;  %s2064_s28 = sphi %s2141_s28, %s2716_s28   ;;  %s2060_s27 = sphi %s2139_s27, %s2715_s27   ;;  %s2056_s0 = sphi %s2137_s0, %s2714_s0   ;;  %s2052_s26 = sphi %s2135_s26, %s2713_s26  }
  0x17   : > { %s2173_s10 = sadd.s32 1, %s2076_s7   ;;  %s107_s11 = sld [smem:[#allocation3 + %s2076_s7]] }
  0x18   : > { %s108_s12 = sld [smem:[#allocation3 + %s2173_s10]]  ;;  %s112_s13 = sadd.s32 1, %s2072_s30 }
  0x19   : > { %p119_p5 = scmp.ne.s32.totalorder %s2072_s30, %s2068_s29  ;;  %p120_p6 = scmp.eq.s32.totalorder %s2076_s7, 0 }
  0x1a   : > { %p125_p7 = scmp.ne.s32.totalorder %s2068_s29, %s2064_s28  ;;  %p126_p8 = scmp.eq.s32.totalorder %s2169_s8, 0 }
  0x1b   : > { %p2183_p9 = por %p120_p6, %p119_p5  ;;  %s163_s15 = ssub.s32 %s2076_s7, %s2173_s10 }
  0x1c   : > { %p2189_p10 = por %p126_p8, %p125_p7  ;;  %p164_p11 = scmp.eq.s32.totalorder %s163_s15, 0 }
  0x1d   : > { %s166_s17 = sadd.s32 1, %s2060_s27  ;;  %p176_p12 = scmp.ne.s32.totalorder %s2060_s27, %s2056_s0 }
  0x1e   : > { %s2682_s16 = scalar_select %p2189_p10, 1, 0 }
  0x1f   : > { %s109_s18 = ssub.s32 %s107_s11, %s108_s12  ;;  %p177_p13 = scmp.eq.s32.totalorder %s2169_s8, 1 }
  0x20   : > { %p110_p0 = scmp.eq.s32.totalorder %s109_s18, 0  ;;  %p182_p1 = scmp.ne.s32.totalorder %s2056_s0, %s2052_s26 }
  0x21   : > { %s2200_s19 = scalar_select %p164_p11, %s2060_s27, %s166_s17  }
  0x22   : > { %s2203_s20 = scalar_select %p110_p0, %s2072_s30, %s112_s13  }
  0x23   : > { %p2205_p2 = por %p177_p13, %p176_p12  ;;  %p183_p3 = scmp.eq.s32.totalorder %s1355_s9, 1 }
  0x24   : > { %2683 = sst [smem:[#allocation13_spill]] %s2203_s20  ;;  %p1863_p5 = scmp.lt.s32.totalorder %s2076_s7, 2 }
  0x25   : > { %s2684_s21 = scalar_select %p2205_p2, 1, 0 }
  0x26   : > { %p2211_p6 = por %p183_p3, %p182_p1  ;;  %s221_s23 = sand.u32 1, %s2072_s30  }
  0x27   : > { %s1358_s24 = sshll.u32 %s221_s23, 7  ;;  %p2218_p7 = pnand %p1863_p5, %p2183_p9 }
  0x28   : > { %s2685_s22 = scalar_select %p2211_p6, 1, 0 }
  0x29   : > { %s1847_s28 = scalar_select %p2183_p9, [#allocation3], [#allocation8] }
  0x2a   : > { %s1848_s11 = scalar_select %p2183_p9, %s2076_s7, 0 }
  0x2b   : > { %s2721_s28 = smov (!%p1863_p5, %s1847_s28), [#allocation9]  ;;  %s225_s12 = scalar_lea.vmem [#allocation4], %s1358_s24 }
  0x2c   : > { %s2723_s11 = smov (!%p1863_p5, %s1848_s11), 0  ;;  %s233_s13 = sshll.u32 %s225_s12, 4  ;;  %s2229_s13 = int_to_ptr.vmem [resolvable:$true] %s233_s13 }
  0x2d   : > { %s226_s9 = sld [smem:[%s2721_s28 + %s2723_s11]]  ;;  %p1361_p8 = scmp.ge.s32.totalorder %s2076_s7, 1 }
  0x2e   : > { %p249_p11 = scmp.lt.s32.totalorder %s2076_s7, 3  ;;  %s2240_s24 = scalar_lea.sflag [#allocation5], %s221_s23 }
  0x2f   : > { %p1956_p13 = pneg %p2218_p7  ;;  %s1959_s20 = scalar_lea.hbm %s2665_s4, 4096 }
  0x30   : > { %p2231_p12 = pnand %p1361_p8, %p249_p11 }
  0x33   : > { %s1376_s17 = sshll.u32 %s226_s9, 11 }
  0x34   : > { %s2238_s14 = scalar_lea.hbm %s2665_s4, %s1376_s17 }
  0x35   : > { %s1954_s28 = scalar_lea.hbm %s2238_s14, 2048  ;;  %p1960_p3 = scmp.lt.u32.totalorder %s2238_s14, %s2665_s4 }
  0x36   : > { %p1955_p9 = scmp.ne.s32.totalorder %s2238_s14, %s1954_s28  ;;  %p1961_p5 = scmp.lt.u32.totalorder %s1959_s20, %s1954_s28 }
  0x37   : > { %p1963_p11 = scmp.lt.u32.totalorder %s1954_s28, %s2238_s14 }
  0x38   : > { %p1957_p0 = pnand %p1956_p13, %p1955_p9  ;;  %p1962_p8 = por %p1961_p5, %p1960_p3 }
  0x3a   : > { %p1958_p1 = pneg %p1957_p0  ;;  %p1964_p4 = por %p1963_p11, %p1962_p8 }
  0x3c   : > { %p1965_p6 = pnand %p1964_p4, %p1958_p1 }
  0x3e   : > { %1968 = shalt.err (!%p1965_p6)
}
  0x3f   : > { %s1969_s23 = scalar_lea.vmem %s2229_s13, 2048  ;;  %s2079_s18 = smov [#allocation4]  }
  0x40   : > { %p1970_p9 = scmp.ne.s32.totalorder %s2229_s13, %s1969_s23  ;;  %s1974_s11 = sshll.u32 %s2079_s18, 4  ;;  %s1975_s11 = int_to_ptr.vmem [resolvable:$false] %s1974_s11 }
  0x41   : > { %s1976_s9 = scalar_lea.vmem %s1975_s11, 4096  ;;  %p1977_p10 = scmp.lt.s32.totalorder %s2229_s13, %s1975_s11 }
  0x42   : > { %p1972_p0 = pnand %p1970_p9, %p1956_p13  ;;  %p1978_p3 = scmp.lt.s32.totalorder %s1976_s9, %s1969_s23 }
  0x44   : > { %p1973_p2 = pneg %p1972_p0  ;;  %p1979_p5 = por %p1978_p3, %p1977_p10 }
  0x46   : > { %p1980_p8 = pnand %p1979_p5, %p1973_p2 }
  0x48   : > { %1983 = shalt.err (!%p1980_p8)
}
  0x49   : > { %s2080_s28 = smov 128   ;;  %s2081_s20 = smov 8  }
  0x4a   : > { %1858 = dma.hbm_to_vmem [thread:$0]  (!%p2218_p7), %s2238_s14, 2048, %s2229_s13, %s2240_s24, %s2080_s28, %s2080_s28, %s2081_s20  }
  0x4b   : > { %253 = sbr.rel (%p2231_p12) target bundleno = 739 (0x2e3), region = 40 }
  0x52   : > { %s255_s12 = sand.u32 1, %s2068_s29   ;;  %p2688_p10 = scmp.ne.s32.totalorder %s2682_s16, 0 }
  0x53   : > { %s1362_s17 = sshll.u32 %s255_s12, 7  ;;  %s256_s18 = scalar_lea.sflag [#allocation5], %s255_s12 }
  0x54   : > { %s2271_s23 = scalar_lea.vmem [#allocation4], %s1362_s17 }
  0x55   : > { %2043 = dma.done.wait (%p2688_p10), %s256_s18, 2048  }
  0x56   : > { %2045 = vsyncadd (%p2688_p10), %s256_s18, 4294965248  ;;  %p298_p2 = scmp.lt.s32.totalorder %s2169_s8, 1  ;;  %v314_v0 = vlaneseq  ;;  %v2082_v21 = vmov 1983009808   ;;  %v2083_v26 = vmov 1934713408  }
  0x57   : > { %v372_v22 = vunpack.c.l.s4 %v2082_v21  ;;  %v405_v27 = vunpack.c.l.s4 %v2083_v26  ;;  %s2084_s16 = smov 64   ;;  %s2085_s11 = smov 32   ;;  %v576_v55 = vld [vmem:[%s2271_s23] sm:$0xff]  ;;  %v577_v56 = vld [vmem:[%s2271_s23 + $0x8] sm:$0xff]  ;;  %v2670_v60 = vmov 0.0|0.0   ;;  %v578_v61 = vld [vmem:[%s2271_s23 + $0x10] sm:$0xff] }
  0x58   : > { %s299_s25 = scalar_select %p298_p2, %s2169_s8, 1  ;;  %v315_v1 = vshrl.u32 %v314_v0, 7  ;;  %v600_v57 = vand.u32 4294901760, %v576_v55  ;;  %v603_v58 = vand.u32 4294901760, %v577_v56  ;;  %1761 = vmatprep.subr.bf16.mxu0 %v2670_v60  ;;  %1689 = vmatprep.subr.bf16.mxu1 %v2670_v60  ;;  %v579_v62 = vld [vmem:[%s2271_s23 + $0x18] sm:$0xff]  ;;  %v606_v63 = vand.u32 4294901760, %v578_v61 }
  0x59   : > { %v373_v25 = vunpack.c.0.s8 %v372_v22  ;;  %v406_v33 = vunpack.c.0.s8 %v405_v27  ;;  %s2086_s9 = smov 96   ;;  %v609_v0 = vand.u32 4294901760, %v579_v62  ;;  %v587_v22 = vld [vmem:[%s2271_s23 + $0x58] sm:$0xff]  ;;  %vm2088_vm0 = vmmov 0   ;;  %s302_s28 = sld [smem:[#allocation3 + %s2169_s8]] }
  0x5a   : > { %s1364_s13 = sshll.u32 %s299_s25, 3  ;;  %v330_v2 = vsub.s32 2, %v315_v1  ;;  %v316_v3 = vsub.s32 0, %v315_v1  ;;  %v337_v4 = vsub.s32 3, %v315_v1  ;;  %v323_v5 = vsub.s32 1, %v315_v1  ;;  %s308_s25 = sld [smem:[#allocation3 + %s2169_s8]] }
  0x5b   : > { %s301_s24 = scalar_lea.vmem %s2662_s1, %s1364_s13  ;;  %v351_v11 = vsub.s32 5, %v315_v1  ;;  %v344_v12 = vsub.s32 4, %v315_v1  ;;  %v365_v15 = vsub.s32 7, %v315_v1  ;;  %v358_v16 = vsub.s32 6, %v315_v1  ;;  %s295_s13 = sand.u32 1, %s2056_s0  }
  0x5c   : > { %v313_v6 = vld [vmem:[%s301_s24] sm:$0xff]  ;;  %v376_v31 = vsub.s32 %v373_v25, %v315_v1  ;;  %v409_v40 = vsub.s32 %v406_v33, %v315_v1  ;;  %v2292_v59 = vpack.c.bf16 %v603_v58, %v600_v57  ;;  %v2302_v1 = vpack.c.bf16 %v609_v0, %v606_v63  ;;  %s1363_s15 = sshll.u32 %s295_s13, 3  ;;  %s1242_s18 = scalar_lea.sflag [#allocation6], %s295_s13 }
  0x5d   : > { %v331_v7 = vrot.slane %v313_v6, %v330_v2  ;;  %v317_v8 = vrot.slane %v313_v6, %v316_v3  ;;  %v338_v9 = vrot.slane %v313_v6, %v337_v4  ;;  %v324_v10 = vrot.slane %v313_v6, %v323_v5  ;;  %v580_v2 = vld [vmem:[%s2271_s23 + $0x20] sm:$0xff]  ;;  %v581_v3 = vld [vmem:[%s2271_s23 + $0x28] sm:$0xff]  ;;  %p2709_p12 = scmp.ne.s32.totalorder %s2684_s21, 0 }
  0x5e   : > { %v352_v13 = vrot.slane %v313_v6, %v351_v11  ;;  %v345_v14 = vrot.slane %v313_v6, %v344_v12  ;;  %v366_v17 = vrot.slane %v313_v6, %v365_v15  ;;  %v359_v18 = vrot.slane %v313_v6, %v358_v16  ;;  %1763 = vmatpush3.bf16.msra.mxu0 %v2292_v59  ;;  %v584_v15 = vld [vmem:[%s2271_s23 + $0x40] sm:$0xff]  ;;  %v585_v16 = vld [vmem:[%s2271_s23 + $0x48] sm:$0xff] }
  0x5f   : > { %333 = vbcast.lane.b32.xlu1 %v331_v7, 256  ;;  %319 = vbcast.lane.b32.xlu0 %v317_v8, 256  ;;  %v612_v4 = vand.u32 4294901760, %v580_v2  ;;  %v615_v5 = vand.u32 4294901760, %v581_v3  ;;  %v582_v7 = vld [vmem:[%s2271_s23 + $0x30] sm:$0xff]  ;;  %v583_v8 = vld [vmem:[%s2271_s23 + $0x38] sm:$0xff]  ;;  %v2316_v11 = vsub.f32 %v576_v55, %v600_v57  ;;  %v2318_v12 = vsub.f32 %v577_v56, %v603_v58 }
  0x60   : > { %1691 = vmatpush3.bf16.msra.mxu1 %v2292_v59  ;;  %1764 = vmatprep.subr.bf16.mxu0 %v2670_v60  ;;  %v624_v26 = vand.u32 4294901760, %v584_v15  ;;  %v627_v27 = vand.u32 4294901760, %v585_v16  ;;  %p303_p4 = scmp.lt.s32.totalorder %s302_s28, 1  ;;  %vm450_vm1 = vcmask 261120   ;;  %vm452_vm2 = vcmask 523264   ;;  %p309_p6 = scmp.lt.s32.totalorder %s308_s25, 1 }
  0x61   : > { %1692 = vmatprep.subr.bf16.mxu1 %v2670_v60  ;;  %v2310_v6 = vpack.c.bf16 %v615_v5, %v612_v4  ;;  %vm454_vm3 = vcmask 785408  }
  0x62   : > { %1766 = vmatpush3.bf16.msra.mxu0 %v2302_v1  ;;  %s2725_s28 = smov (!%p303_p4, %s302_s28), 1  ;;  %s2727_s25 = smov (!%p309_p6, %s308_s25), 1 }
  0x63   : > { %340 = vbcast.lane.b32.xlu1 %v338_v9, 256  ;;  %326 = vbcast.lane.b32.xlu0 %v324_v10, 256  ;;  %v618_v9 = vand.u32 4294901760, %v582_v7  ;;  %v621_v10 = vand.u32 4294901760, %v583_v8  ;;  %s305_s17 = scalar_lea.vmem %s2663_s2, %s2725_s28 }
  0x64   : > { %1694 = vmatpush3.bf16.msra.mxu1 %v2302_v1  ;;  %1767 = vmatprep.subr.bf16.mxu0 %v2670_v60 }
  0x65   : > { %1695 = vmatprep.subr.bf16.mxu1 %v2670_v60  ;;  %v2334_v21 = vsub.f32 %v582_v7, %v618_v9  ;;  %v2340_v25 = vsub.f32 %v583_v8, %v621_v10 }
  0x66   : > { %1769 = vmatpush3.bf16.msra.mxu0 %v2310_v6 }
  0x67   : > { %354 = vbcast.lane.b32.xlu1 %v352_v13, 256  ;;  %347 = vbcast.lane.b32.xlu0 %v345_v14, 256  ;;  %v2320_v13 = vsub.f32 %v578_v61, %v606_v63  ;;  %v2322_v14 = vsub.f32 %v579_v62, %v609_v0 }
  0x68   : > { %1697 = vmatpush3.bf16.msra.mxu1 %v2310_v6  ;;  %1770 = vmatprep.subr.bf16.mxu0 %v2670_v60 }
  0x69   : > { %1698 = vmatprep.subr.bf16.mxu1 %v2670_v60  ;;  %v707_v61 = vand.u32 4294901760, %v2320_v13  ;;  %v714_v62 = vand.u32 4294901760, %v2322_v14 }
  0x6b   : > { %368 = vbcast.lane.b32.xlu1 %v366_v17, 256  ;;  %361 = vbcast.lane.b32.xlu0 %v359_v18, 256  ;;  %v586_v17 = vld [vmem:[%s2271_s23 + $0x50] sm:$0xff]  ;;  %v2328_v18 = vsub.f32 %v580_v2, %v612_v4  ;;  %v2402_v0 = vpack.c.bf16 %v714_v62, %v707_v61  ;;  %v708_v2 = vsub.f32 %v2320_v13, %v707_v61 }
  0x6d   : > { %v709_v4 = vand.u32 4294901760, %v708_v2  ;;  %v721_v7 = vand.u32 4294901760, %v2328_v18 }
  0xd1   : > { %v334_v19 = vpop.permute.xlu1 %333  ;;  %v320_v20 = vpop.permute.xlu0 %319 }
  0xd2   : > { %v370_v32 = vcombine.low %v320_v20, %v334_v19  ;;  %v2330_v19 = vsub.f32 %v581_v3, %v615_v5  ;;  %v2332_v20 = vpack.c.bf16 %v621_v10, %v618_v9  ;;  %v715_v3 = vsub.f32 %v2322_v14, %v714_v62 }
  0xd4   : > { %v377_v37 = vrot.slane %v370_v32, %v376_v31  ;;  %1772 = vmatpush3.bf16.msra.mxu0 %v2332_v20  ;;  %1700 = vmatpush3.bf16.msra.mxu1 %v2332_v20  ;;  %v716_v5 = vand.u32 4294901760, %v715_v3  ;;  %v728_v8 = vand.u32 4294901760, %v2330_v19 }
  0xd5   : > { %v341_v23 = vpop.permute.xlu1 %340  ;;  %v327_v24 = vpop.permute.xlu0 %326  ;;  %1773 = vmatprep.subr.bf16.mxu0 %v2670_v60  ;;  %1701 = vmatprep.subr.bf16.mxu1 %v2670_v60 }
  0xd6   : > { %v378_v28 = vcombine.low %v327_v24, %v341_v23  ;;  %v588_v23 = vld [vmem:[%s2271_s23 + $0x60] sm:$0xff]  ;;  %v589_v24 = vld [vmem:[%s2271_s23 + $0x68] sm:$0xff]  ;;  %v2408_v9 = vpack.c.bf16 %v716_v5, %v709_v4  ;;  %v2410_v10 = vpack.c.bf16 %v728_v8, %v721_v7 }
  0xd7   : > { %v636_v32 = vand.u32 4294901760, %v588_v23  ;;  %v639_v33 = vand.u32 4294901760, %v589_v24 }
  0xd8   : > { %v385_v34 = vrot.slane %v378_v28, %v376_v31  ;;  %v590_v28 = vld [vmem:[%s2271_s23 + $0x70] sm:$0xff] }
  0xd9   : > { %v355_v29 = vpop.permute.xlu1 %354  ;;  %v348_v30 = vpop.permute.xlu0 %347 }
  0xda   : > { %v402_v41 = vcombine.low %v377_v37, %v385_v34  ;;  %v403_v42 = vcombine.high %v377_v37, %v385_v34  ;;  %v2347_v34 = vpack.c.bf16 %v627_v27, %v624_v26  ;;  %v642_v37 = vand.u32 4294901760, %v590_v28 }
  0xdc   : > { %v417_v47 = vrot.slane %v403_v42, %v409_v40  ;;  %v2282_v49 = vrot.slane %v402_v41, %v409_v40  ;;  %2689 = vst [vmem:[#allocation14_spill] sm:$0xff] %v2347_v34  ;;  %v2358_v41 = vsub.f32 %v588_v23, %v636_v32  ;;  %v2360_v42 = vsub.f32 %v589_v24, %v639_v33 }
  0xdd   : > { %v369_v35 = vpop.permute.xlu1 %368  ;;  %v362_v36 = vpop.permute.xlu0 %361  ;;  %1775 = vmatpush3.bf16.msra.mxu0 %v2347_v34  ;;  %1703 = vmatpush3.bf16.msra.mxu1 %v2347_v34  ;;  %v735_v23 = vand.u32 4294901760, %v2334_v21  ;;  %v742_v24 = vand.u32 4294901760, %v2340_v25 }
  0xde   : > { %v394_v38 = vcombine.low %v355_v29, %v369_v35  ;;  %v386_v39 = vcombine.low %v348_v30, %v362_v36  ;;  %v591_v29 = vld [vmem:[%s2271_s23 + $0x78] sm:$0xff]  ;;  %v630_v30 = vand.u32 4294901760, %v586_v17  ;;  %v2349_v35 = vsub.f32 %v584_v15, %v624_v26  ;;  %1776 = vmatprep.subr.bf16.mxu0 %v2670_v60  ;;  %1704 = vmatprep.subr.bf16.mxu1 %v2670_v60 }
  0xdf   : > { %v2351_v36 = vsub.f32 %v585_v16, %v627_v27  ;;  %v722_v15 = vsub.f32 %v2328_v18, %v721_v7  ;;  %v729_v16 = vsub.f32 %v2330_v19, %v728_v8  ;;  %v2418_v27 = vpack.c.bf16 %v742_v24, %v735_v23 }
  0xe0   : > { %v401_v43 = vrot.slane %v394_v38, %v376_v31  ;;  %v393_v44 = vrot.slane %v386_v39, %v376_v31  ;;  %v633_v31 = vand.u32 4294901760, %v587_v22  ;;  %2690 = vst [vmem:[#allocation15_spill] sm:$0xff] %v2349_v35  ;;  %v2354_v38 = vsub.f32 %v586_v17, %v630_v30 }
  0xe1   : > { %2691 = vst [vmem:[#allocation16_spill] sm:$0xff] %v2351_v36  ;;  %v723_v17 = vand.u32 4294901760, %v722_v15  ;;  %v777_v7 = vand.u32 4294901760, %v2358_v41  ;;  %v784_v8 = vand.u32 4294901760, %v2360_v42 }
  0xe2   : > { %v418_v45 = vcombine.low %v393_v44, %v401_v43  ;;  %v419_v46 = vcombine.high %v393_v44, %v401_v43  ;;  %v2356_v39 = vsub.f32 %v587_v22, %v633_v31  ;;  %v2362_v43 = vsub.f32 %v590_v28, %v642_v37 }
  0xe3   : > { %v2366_v44 = vpack.c.bf16 %v633_v31, %v630_v30  ;;  %v730_v22 = vand.u32 4294901760, %v729_v16  ;;  %v736_v28 = vsub.f32 %v2334_v21, %v735_v23  ;;  %v2443_v16 = vpack.c.bf16 %v784_v8, %v777_v7 }
  0xe4   : > { %v433_v48 = vrot.slane %v419_v46, %v409_v40  ;;  %v2284_v50 = vrot.slane %v418_v45, %v409_v40  ;;  %v645_v40 = vand.u32 4294901760, %v591_v29  ;;  %v2672_v46 = vmov 0.0  }
  0xe5   : > { %2692 = vst [vmem:[#allocation17_spill] sm:$0xff] %v2366_v44  ;;  %1616 = vmatprep.mubr.msk.f32.mxu0 %vm2088_vm0, %v2672_v46  ;;  %1511 = vmatprep.mubr.msk.f32.mxu1 %vm2088_vm0, %v2672_v46  ;;  %v2416_v26 = vpack.c.bf16 %v730_v22, %v723_v17  ;;  %v737_v30 = vand.u32 4294901760, %v736_v28  ;;  %v778_v17 = vsub.f32 %v2358_v41, %v777_v7  ;;  %v791_v28 = vand.u32 4294901760, %v2362_v43 }
  0xe6   : > { %v436_v51 = vcombine.low %v417_v47, %v433_v48  ;;  %v435_v52 = vcombine.high %v2282_v49, %v2284_v50  ;;  %v434_v53 = vcombine.low %v2282_v49, %v2284_v50  ;;  %v437_v54 = vcombine.high %v417_v47, %v433_v48  ;;  %1778 = vmatpush3.bf16.msra.mxu0 %v2366_v44 }
  0xe7   : > { %v2368_v45 = vsub.f32 %v591_v29, %v645_v40  ;;  %1706 = vmatpush3.bf16.msra.mxu1 %v2366_v44  ;;  %v2378_v47 = vpack.c.bf16 %v639_v33, %v636_v32  ;;  %1779 = vmatprep.subr.bf16.mxu0 %v2670_v60  ;;  %v2384_v48 = vpack.c.bf16 %v645_v40, %v642_v37  ;;  %v749_v32 = vand.u32 4294901760, %v2349_v35 }
  0xe8   : > { %443 = vrot.lane.b32.xlu1 %v436_v51, %s2084_s16  ;;  %439 = vrot.lane.b32.xlu0 %v435_v52, %s2085_s11  ;;  %v693_v51 = vand.u32 4294901760, %v2316_v11  ;;  %v700_v52 = vand.u32 4294901760, %v2318_v12  ;;  %v743_v29 = vsub.f32 %v2340_v25, %v742_v24  ;;  %v756_v33 = vand.u32 4294901760, %v2351_v36  ;;  %s311_s16 = scalar_lea.vmem %s2666_s5, %s2727_s25  ;;  %s1373_s11 = sshll.u32 %s2169_s8, 7 }
  0xe9   : > { %2693 = vst [vmem:[#allocation18_spill] sm:$0xff] %v2378_v47  ;;  %1707 = vmatprep.subr.bf16.mxu1 %v2670_v60  ;;  %2694 = vst [vmem:[#allocation19_spill] sm:$0xff] %v2384_v48  ;;  %v785_v22 = vsub.f32 %v2360_v42, %v784_v8  ;;  %v779_v23 = vand.u32 4294901760, %v778_v17  ;;  %v2094_v8 = vmov 920167782   ;;  %s2096_s8 = smov [#allocation7]  }
  0xea   : > { %1781 = vmatpush3.bf16.msra.mxu0 %v2378_v47  ;;  %v694_v55 = vsub.f32 %v2316_v11, %v693_v51  ;;  %v701_v56 = vsub.f32 %v2318_v12, %v700_v52  ;;  %v744_v31 = vand.u32 4294901760, %v743_v29  ;;  %v2427_v40 = vpack.c.bf16 %v756_v33, %v749_v32  ;;  %s1988_s25 = sshll.u32 %s2096_s8, 4  ;;  %s1989_s25 = int_to_ptr.vmem [resolvable:$false] %s1988_s25 }
  0xeb   : > { %1709 = vmatpush3.bf16.msra.mxu1 %v2378_v47  ;;  %1782 = vmatprep.subr.bf16.mxu0 %v2670_v60  ;;  %v786_v24 = vand.u32 4294901760, %v785_v22  ;;  %v798_v29 = vand.u32 4294901760, %v2368_v45  ;;  %v2095_v46 = vmov 1326507024  }
  0xec   : > { %447 = vrot.lane.b32.xlu0 %v437_v54, %s2086_s9  ;;  %1710 = vmatprep.subr.bf16.mxu1 %v2670_v60  ;;  %v2394_v54 = vpack.c.bf16 %v700_v52, %v693_v51  ;;  %v695_v57 = vand.u32 4294901760, %v694_v55  ;;  %v702_v58 = vand.u32 4294901760, %v701_v56  ;;  %v2425_v37 = vpack.c.bf16 %v744_v31, %v737_v30  ;;  %s297_s9 = scalar_lea.vmem [#allocation7], %s1363_s15  ;;  %s1990_s15 = scalar_lea.vmem %s1989_s25, 256 }
  0xed   : > { %v750_v51 = vsub.f32 %v2349_v35, %v749_v32  ;;  %v757_v52 = vsub.f32 %v2351_v36, %v756_v33  ;;  %v2449_v30 = vpack.c.bf16 %v786_v24, %v779_v23  ;;  %v2451_v31 = vpack.c.bf16 %v798_v29, %v791_v28  ;;  %s1255_s28 = sshll.u32 %s297_s9, 4  ;;  %s2611_s28 = int_to_ptr.vmem [resolvable:$true] %s1255_s28 }
  0xee   : > { %1784 = vmatpush3.bf16.msra.mxu0 %v2384_v48  ;;  %v2400_v63 = vpack.c.bf16 %v702_v58, %v695_v57  ;;  %v763_v57 = vand.u32 4294901760, %v2354_v38  ;;  %v770_v58 = vand.u32 4294901760, %v2356_v39  ;;  %v792_v32 = vsub.f32 %v2362_v43, %v791_v28  ;;  %s1984_s23 = scalar_lea.vmem %s2611_s28, 128  ;;  %p1991_p11 = scmp.lt.s32.totalorder %s2611_s28, %s1989_s25 }
  0xef   : > { %1712 = vmatpush3.bf16.msra.mxu1 %v2384_v48  ;;  %1785 = vmatprep.subr.bf16.mxu0 %v2670_v60  ;;  %v751_v55 = vand.u32 4294901760, %v750_v51  ;;  %v758_v56 = vand.u32 4294901760, %v757_v52  ;;  %v799_v33 = vsub.f32 %v2368_v45, %v798_v29  ;;  %p1985_p7 = scmp.ne.s32.totalorder %s2611_s28, %s1984_s23  ;;  %p1992_p9 = scmp.lt.s32.totalorder %s1990_s15, %s1984_s23 }
  0xf0   : > { %1713 = vmatprep.subr.bf16.mxu1 %v2670_v60  ;;  %v2435_v62 = vpack.c.bf16 %v770_v58, %v763_v57  ;;  %v764_v2 = vsub.f32 %v2354_v38, %v763_v57  ;;  %v771_v3 = vsub.f32 %v2356_v39, %v770_v58  ;;  %v793_v51 = vand.u32 4294901760, %v792_v32 }
  0xf1   : > { %v2433_v61 = vpack.c.bf16 %v758_v56, %v751_v55  ;;  %v800_v52 = vand.u32 4294901760, %v799_v33  ;;  %v2093_v32 = vmov 2102212464   ;;  %p1986_p13 = pnand %p1985_p7, %p2709_p12  ;;  %p1993_p0 = por %p1992_p9, %p1991_p11 }
  0xf2   : > { %v765_v4 = vand.u32 4294901760, %v764_v2  ;;  %v772_v5 = vand.u32 4294901760, %v771_v3  ;;  %v1365_v2 = vld [vmem:[%s305_s17] ss:$0 sm:$0xff]  ;;  %s2609_s17 = scalar_lea.hbm %s2667_s6, %s1373_s11 }
  0xf3   : > { %v2461_v58 = vpack.c.bf16 %v800_v52, %v793_v51  ;;  %p1987_p1 = pneg %p1986_p13 }
  0xf4   : > { %v2441_v15 = vpack.c.bf16 %v772_v5, %v765_v4  ;;  %v1366_v5 = vld [vmem:[%s2664_s3] ss:$0 sm:$0xff] }
  0xf5   : > { %p1994_p3 = pnand %p1993_p0, %p1987_p1 }
 0x15a   : > { %v440_v55 = vpop.permute.xlu0 %439  ;;  %v444_v56 = vpop.permute.xlu1 %443 }
 0x15b   : > { %v451_v57 = vsel %vm450_vm1, %v434_v53, %v440_v55 }
 0x15c   : > { %v453_v4 = vsel %vm452_vm2, %v451_v57, %v444_v56 }
 0x15e   : > { %v448_v3 = vpop.permute.xlu0 %447 }
 0x15f   : > { %v455_v7 = vsel %vm454_vm3, %v453_v4, %v448_v3  ;;  %v2090_v3 = vmov 683565275  }
 0x160   : > { %v463_v17 = vmul.f32 %v1365_v2, %v455_v7 }
 0x162   : > { %v2468_v22 = vadd.f32 %v1366_v5, %v463_v17  ;;  %v2091_v5 = vmov 2475754826  }
 0x164   : > { %v475_v50 = vand.u32 2139095040, %v2468_v22  ;;  %v2674_v28 = vand.u32 2147483647, %v2468_v22  ;;  %vm474_vm11 = vcmp.lt.s32.totalorder %v2468_v22, 0  ;;  %vm564_vm1 = vweird.f32 %v2468_v22 }
 0x166   : > { %v476_v53 = vshrl.u32 %v475_v50, 23  ;;  %v479_v33 = vand.u32 8388607, %v2674_v28  ;;  %v2092_v50 = vmov 2131351028  }
 0x168   : > { %v1367_v24 = vadd.s32 4294967169, %v476_v53  ;;  %v480_v57 = vor.u32 8388608, %v479_v33 }
 0x16a   : > { %v482_v29 = vadd.s32 1, %v1367_v24 }
 0x16c   : > { %vm483_vm4 = vcmp.gt.s32.totalorder %v482_v29, 0 }
 0x16d   : > { %v484_v51 = vsel %vm483_vm4, %v482_v29, 0 }
 0x16e   : > { %v486_v52 = vand.u32 31, %v484_v51  ;;  %v485_v2 = vshrl.u32 %v484_v51, 5  ;;  %v1753_v51 = vpack.c.bf16 %v2356_v39, %v2354_v38  ;;  %v1371_v38 = vld [vmem:[%s311_s16] ss:$0 sm:$0xff] }
 0x170   : > { %v487_v56 = vsub.s32 32, %v486_v52  ;;  %v489_v4 = vshll.u32 %v2090_v3, %v486_v52  ;;  %v492_v7 = vshll.u32 %v2091_v5, %v486_v52  ;;  %v495_v24 = vshll.u32 %v2092_v50, %v486_v52 }
 0x171   : > { %v498_v49 = vshll.u32 %v2093_v32, %v486_v52  ;;  %v501_v60 = vshll.u32 %v2094_v8, %v486_v52  ;;  %vm504_vm5 = vcmp.lt.s32.totalorder %v485_v2, 1  ;;  %vm507_vm6 = vcmp.lt.s32.totalorder %v485_v2, 4 }
 0x172   : > { %v490_v17 = vshrl.u32 %v2091_v5, %v487_v56  ;;  %v493_v53 = vshrl.u32 %v2092_v50, %v487_v56  ;;  %v496_v23 = vshrl.u32 %v2093_v32, %v487_v56  ;;  %v499_v29 = vshrl.u32 %v2094_v8, %v487_v56 }
 0x173   : > { %v502_v28 = vshrl.u32 %v2095_v46, %v487_v56  ;;  %v488_v5 = vshrl.u32 %v2090_v3, %v487_v56  ;;  %vm506_vm7 = vcmp.lt.s32.totalorder %v485_v2, 3  ;;  %v1756_v46 = vpack.c.bf16 %v2360_v42, %v2358_v41 }
 0x174   : > { %v491_v55 = vor.u32 %v490_v17, %v489_v4  ;;  %v494_v48 = vor.u32 %v493_v53, %v492_v7  ;;  %v497_v33 = vor.u32 %v496_v23, %v495_v24  ;;  %v500_v47 = vor.u32 %v499_v29, %v498_v49 }
 0x175   : > { %v503_v44 = vor.u32 %v502_v28, %v501_v60  ;;  %vm505_vm8 = vcmp.lt.s32.totalorder %v485_v2, 2  ;;  %v520_v52 = vshll.u32 %v480_v57, 8 }
 0x176   : > { %v509_v50 = vsel %vm507_vm6, %v497_v33, 2102212464  ;;  %v512_v35 = vsel %vm504_vm5, %v491_v55, %v494_v48  ;;  %v516_v36 = vsel %vm504_vm5, %v494_v48, %v497_v33  ;;  %v513_v32 = vsel %vm507_vm6, %v500_v47, 920167782 }
 0x177   : > { %v517_v34 = vsel %vm507_vm6, %v503_v44, 1326507024  ;;  %v514_v8 = vsel %vm506_vm7, %v497_v33, %v513_v32  ;;  %v508_v4 = vsel %vm504_vm5, %v488_v5, %v491_v55  ;;  %v510_v7 = vsel %vm506_vm7, %v494_v48, %v509_v50 }
 0x178   : > { %v518_v23 = vsel %vm506_vm7, %v500_v47, %v517_v34  ;;  %v515_v49 = vsel %vm505_vm8, %v512_v35, %v514_v8  ;;  %v1759_v44 = vpack.c.bf16 %v2368_v45, %v2362_v43  ;;  %v511_v53 = vsel %vm505_vm8, %v508_v4, %v510_v7 }
 0x179   : > { %v519_v60 = vsel %vm505_vm8, %v516_v36, %v518_v23  ;;  %v2489_v56 = vmul.u32.u64.low %v520_v52, %v515_v49  ;;  %v2490_v3 = vmul.u32.u64.high %v520_v52, %v515_v49, %v2489_v56  ;;  %v527_v34 = vmul.u32 %v520_v52, %v511_v53 }
 0x17a   : > { %v2486_v28 = vmul.u32.u64.low %v520_v52, %v519_v60  ;;  %v2487_v17 = vmul.u32.u64.high %v520_v52, %v519_v60, %v2486_v28 }
 0x17b   : > { %v530_v2 = vadd.s32 1, %v2490_v3 }
 0x17c   : > { %vm529_vm9 = vc.u32 %v2487_v17, %v2489_v56  ;;  %v528_v32 = vadd.s32 %v2489_v56, %v2487_v17 }
 0x17d   : > { %v531_v47 = vsel %vm529_vm9, %v530_v2, %v2490_v3 }
 0x17e   : > { %v532_v48 = vadd.s32 %v531_v47, %v527_v34 }
 0x180   : > { %v533_v35 = vadd.s32 536870912, %v532_v48 }
 0x182   : > { %v534_v36 = vshrl.u32 %v533_v35, 30 }
 0x184   : > { %v535_v55 = vshll.u32 %v534_v36, 30  ;;  %v558_v34 = vsub.s32 4, %v534_v36 }
 0x186   : > { %v536_v57 = vsub.s32 %v532_v48, %v535_v55  ;;  %v2695_v48 = vand.u32 2147483647, %v2468_v22  ;;  %v559_v17 = vsel %vm474_vm11, %v558_v34, %v534_v36 }
 0x188   : > { %v538_v24 = vsub.s32 0, %v536_v57  ;;  %vm473_vm12 = vcmp.le.f32.partialorder %v2695_v48, 0.7853982 }
 0x189   : > { %v561_v55 = vsel %vm473_vm12, 0, %v559_v17 }
 0x18a   : > { %v1368_v29 = vmin.u32 %v538_v24, %v536_v57 }
 0x18c   : > { %v540_v33 = vclz %v1368_v29 }
 0x18e   : > { %v1369_v5 = vadd.s32 4294967294, %v540_v33 }
 0x190   : > { %vm1370_vm10 = vcmp.lt.s32.totalorder %v1369_v5, 0 }
 0x191   : > { %v543_v50 = vsel %vm1370_vm10, 0, %v1369_v5 }
 0x192   : > { %v544_v8 = vsub.s32 32, %v543_v50  ;;  %v548_v23 = vsub.s32 4294967266, %v543_v50  ;;  %v545_v4 = vshll.u32 %v536_v57, %v543_v50  ;;  %v565_v57 = vadd.s32 3, %v561_v55 }
 0x194   : > { %v546_v7 = vshrl.u32 %v528_v32, %v544_v8  ;;  %v549_v52 = vadd.s32 127, %v548_v23  ;;  %v566_v24 = vand.u32 3, %v565_v57 }
 0x196   : > { %v547_v49 = vor.u32 %v546_v7, %v545_v4  ;;  %v550_v60 = vshll.u32 %v549_v52, 23  ;;  %vm571_vm13 = vcmp.eq.s32.totalorder %v566_v24, 2  ;;  %vm568_vm14 = vcmp.eq.s32.totalorder %v566_v24, 0 }
 0x197   : > { %vm567_vm15 = vcmp.lt.s32.totalorder %v566_v24, 2 }
 0x198   : > { %v551_v28 = vor.u32 4788187, %v550_v60  ;;  %v554_v53 = vcvt.s32.f32 %v547_v49  ;;  %v2696_v60 = vmov 0.0  }
 0x19a   : > { %v552_v3 = vand.u32 2147483647, %v551_v28  ;;  %v2697_v28 = vmov 0.0|0.0  }
 0x19c   : > { %v555_v2 = vmul.f32 %v554_v53, %v552_v3 }
 0x19e   : > { %v556_v47 = vxor.u32 2147483648, %v555_v2 }
 0x1a0   : > { %v557_v35 = vsel %vm474_vm11, %v556_v47, %v555_v2 }
 0x1a1   : > { %v560_v56 = vsel %vm473_vm12, %v2468_v22, %v557_v35 }
 0x1a2   : > { %1938 = vcosq.f32 %v560_v56 }
 0x1a3   : > { %1940 = vsinq.f32 %v560_v56 }
 0x1ac   : > { %v1939_v29 = vpop.eup %1938 }
 0x1ad   : > { %v1941_v33 = vpop.eup %1940  ;;  %v572_v5 = vxor.u32 2147483648, %v1939_v29 }
 0x1ae   : > { %v569_v50 = vxor.u32 2147483648, %v1941_v33 }
 0x1af   : > { %v573_v32 = vsel %vm571_vm13, %v572_v5, %v1941_v33 }
 0x1b0   : > { %v570_v8 = vsel %vm568_vm14, %v1939_v29, %v569_v50 }
 0x1b1   : > { %v574_v23 = vsel %vm567_vm15, %v570_v8, %v573_v32 }
 0x1b2   : > { %v575_v36 = vsel %vm564_vm1, nan, %v574_v23 }
 0x1b3   : > { %v2503_v4 = vand.u32 4294901760, %v575_v36 }
 0x1b5   : > { %v2506_v7 = vsub.f32 %v575_v36, %v2503_v4 }
 0x1b7   : > { %v682_v52 = vand.u32 4294901760, %v2506_v7 }
 0x1b9   : > { %1617 = vmatmul.mubr.f32.vlgmr.msra.gmra.mrb[0].mxu0 %v682_v52  ;;  %v683_v49 = vsub.f32 %v2506_v7, %v682_v52 }
 0x1ba   : > { %1787 = vmatpush3.bf16.msra.mxu0 %v2394_v54  ;;  %1651 = vmatprep.mubr.msk.f32.mxu0 %vm2088_vm0, %v2696_v60  ;;  %v2698_v54 = vpack.c.bf16 %v2318_v12, %v2316_v11  ;;  %v2701_v11 = vpack.c.bf16 %v2340_v25, %v2334_v21  ;;  %v2702_v12 = vld [vmem:[#allocation14_spill] sm:$0xff] }
 0x1bb   : > { %1788 = vmatprep.subr.bf16.mxu0 %v2697_v28  ;;  %v684_v22 = vand.u32 4294901760, %v683_v49 }
 0x1bd   : > { %1512 = vmatmul.mubr.f32.vlgmr.msra.gmra.mrb[0].mxu1 %v684_v22 }
 0x1be   : > { %1715 = vmatpush3.bf16.msra.mxu1 %v2400_v63  ;;  %1790 = vmatpush3.bf16.msra.mxu0 %v2402_v0 }
 0x1bf   : > { %1716 = vmatprep.subr.bf16.mxu1 %v2697_v28  ;;  %1791 = vmatprep.subr.bf16.mxu0 %v2697_v28 }
 0x1c0   : > { %1546 = vmatprep.mubr.msk.f32.mxu1 %vm2088_vm0, %v2696_v60 }
 0x1c2   : > { %1718 = vmatpush3.bf16.msra.mxu1 %v2408_v9  ;;  %1793 = vmatpush3.bf16.msra.mxu0 %v2410_v10 }
 0x1c3   : > { %1719 = vmatprep.subr.bf16.mxu1 %v2697_v28  ;;  %1794 = vmatprep.subr.bf16.mxu0 %v2697_v28 }
 0x1c6   : > { %1721 = vmatpush3.bf16.msra.mxu1 %v2416_v26  ;;  %1796 = vmatpush3.bf16.msra.mxu0 %v2418_v27 }
 0x1c7   : > { %1722 = vmatprep.subr.bf16.mxu1 %v2697_v28  ;;  %1797 = vmatprep.subr.bf16.mxu0 %v2697_v28 }
 0x1ca   : > { %1724 = vmatpush3.bf16.msra.mxu1 %v2425_v37  ;;  %1799 = vmatpush3.bf16.msra.mxu0 %v2427_v40 }
 0x1cb   : > { %1725 = vmatprep.subr.bf16.mxu1 %v2697_v28  ;;  %1800 = vmatprep.subr.bf16.mxu0 %v2697_v28 }
 0x1ce   : > { %1727 = vmatpush3.bf16.msra.mxu1 %v2433_v61  ;;  %1802 = vmatpush3.bf16.msra.mxu0 %v2435_v62 }
 0x1cf   : > { %1728 = vmatprep.subr.bf16.mxu1 %v2697_v28  ;;  %1803 = vmatprep.subr.bf16.mxu0 %v2697_v28 }
 0x1d2   : > { %1730 = vmatpush3.bf16.msra.mxu1 %v2441_v15  ;;  %1805 = vmatpush3.bf16.msra.mxu0 %v2443_v16 }
 0x1d3   : > { %1731 = vmatprep.subr.bf16.mxu1 %v2697_v28  ;;  %1806 = vmatprep.subr.bf16.mxu0 %v2697_v28 }
 0x1d6   : > { %1733 = vmatpush3.bf16.msra.mxu1 %v2449_v30  ;;  %1808 = vmatpush3.bf16.msra.mxu0 %v2451_v31 }
 0x1d7   : > { %1734 = vmatprep.subr.bf16.mxu1 %v2697_v28  ;;  %1809 = vmatprep.subr.bf16.mxu0 %v2697_v28 }
 0x1d9   : > { %1652 = vmatmul.mubr.f32.vlgmr.msra.gmra.mrb[0].mxu0 %v2503_v4 }
 0x1da   : > { %1736 = vmatpush3.bf16.msra.mxu1 %v2461_v58  ;;  %1811 = vmatpush3.bf16.msra.mxu0 %v2292_v59  ;;  %v2699_v59 = vpack.c.bf16 %v2322_v14, %v2320_v13  ;;  %v2704_v13 = vld [vmem:[#allocation15_spill] sm:$0xff] }
 0x1db   : > { %1737 = vmatprep.subr.bf16.mxu1 %v2697_v28  ;;  %1812 = vmatprep.subr.bf16.mxu0 %v2697_v28 }
 0x1dc   : > { %1686 = vmatprep.mubr.msk.f32.mxu0 %vm2088_vm0, %v2696_v60 }
 0x1dd   : > { %1547 = vmatmul.mubr.f32.vlgmr.msra.gmra.mrb[0].mxu1 %v2503_v4 }
 0x1de   : > { %1739 = vmatpush3.bf16.msra.mxu1 %v2698_v54  ;;  %1814 = vmatpush3.bf16.msra.mxu0 %v2302_v1  ;;  %v2700_v1 = vpack.c.bf16 %v2330_v19, %v2328_v18  ;;  %v2706_v18 = vld [vmem:[#allocation17_spill] sm:$0xff]  ;;  %v2707_v19 = vld [vmem:[#allocation18_spill] sm:$0xff] }
 0x1df   : > { %1740 = vmatprep.subr.bf16.mxu1 %v2697_v28  ;;  %1815 = vmatprep.subr.bf16.mxu0 %v2697_v28 }
 0x1e0   : > { %1581 = vmatprep.mubr.msk.f32.mxu1 %vm2088_vm0, %v2696_v60 }
 0x1e2   : > { %1742 = vmatpush3.bf16.msra.mxu1 %v2699_v59  ;;  %1817 = vmatpush3.bf16.msra.mxu0 %v2310_v6  ;;  %v2703_v6 = vld [vmem:[#allocation16_spill] sm:$0xff] }
 0x1e3   : > { %1743 = vmatprep.subr.bf16.mxu1 %v2697_v28  ;;  %1818 = vmatprep.subr.bf16.mxu0 %v2697_v28  ;;  %v2705_v14 = vpack.c.bf16 %v2703_v6, %v2704_v13 }
 0x1e6   : > { %1745 = vmatpush3.bf16.msra.mxu1 %v2700_v1  ;;  %1820 = vmatpush3.bf16.msra.mxu0 %v2332_v20  ;;  %v2708_v20 = vld [vmem:[#allocation19_spill] sm:$0xff] }
 0x1e7   : > { %1746 = vmatprep.subr.bf16.mxu1 %v2697_v28  ;;  %1821 = vmatprep.subr.bf16.mxu0 %v2697_v28 }
 0x1ea   : > { %1748 = vmatpush3.bf16.msra.mxu1 %v2701_v11  ;;  %1823 = vmatpush3.bf16.msra.mxu0 %v2702_v12 }
 0x1eb   : > { %1749 = vmatprep.subr.bf16.mxu1 %v2697_v28  ;;  %1824 = vmatprep.subr.bf16.mxu0 %v2697_v28 }
 0x1ee   : > { %1751 = vmatpush3.bf16.msra.mxu1 %v2705_v14  ;;  %1826 = vmatpush3.bf16.msra.mxu0 %v2706_v18 }
 0x1ef   : > { %1752 = vmatprep.subr.bf16.mxu1 %v2697_v28  ;;  %1827 = vmatprep.subr.bf16.mxu0 %v2697_v28 }
 0x1f2   : > { %1754 = vmatpush3.bf16.msra.mxu1 %v1753_v51  ;;  %1829 = vmatpush3.bf16.msra.mxu0 %v2707_v19 }
 0x1f3   : > { %1755 = vmatprep.subr.bf16.mxu1 %v2697_v28  ;;  %1830 = vmatprep.subr.bf16.mxu0 %v2697_v28 }
 0x1f6   : > { %1757 = vmatpush3.bf16.msra.mxu1 %v1756_v46  ;;  %1832 = vmatpush3.bf16.msra.mxu0 %v2708_v20 }
 0x1f7   : > { %1758 = vmatprep.subr.bf16.mxu1 %v2697_v28 }
 0x1f9   : > { %1687 = vmatmul.mubr.f32.vlgmr.msra.gmra.mrb[0].mxu0 %v2503_v4 }
 0x1fa   : > { %1760 = vmatpush3.bf16.msra.mxu1 %v1759_v44 }
 0x1fd   : > { %1582 = vmatmul.mubr.f32.vlgmr.msra.gmra.mrb[0].mxu1 %v2506_v7 }
 0x2cc   : > { %v1236_v21 = vpop.f32.mrb[0].mxu0 }
 0x2cd   : > { %v1688_v25 = vpop.f32.mrb[1].mxu0 }
 0x2d0   : > { %v941_v39 = vpop.f32.mrb[0].mxu1 }
 0x2d1   : > { %v1833_v41 = vadd.f32 %v1371_v38, %v941_v39  ;;  %v1583_v42 = vpop.f32.mrb[1].mxu1 }
 0x2d3   : > { %v1834_v43 = vadd.f32 %v1833_v41, %v1236_v21 }
 0x2d5   : > { %1240 = vst [vmem:[%s297_s9] sm:$0xff] %v1834_v43 }
 0x2d6   : > { %1997 = shalt.err (!%p1994_p3)
}
 0x2d7   : > { %s1998_s13 = scalar_lea.hbm %s2609_s17, 128  ;;  %s2002_s16 = scalar_lea.hbm %s2667_s6, 256 }
 0x2d8   : > { %p1999_p5 = scmp.ne.s32.totalorder %s2609_s17, %s1998_s13  ;;  %p2003_p2 = scmp.lt.u32.totalorder %s2609_s17, %s2667_s6 }
 0x2d9   : > { %p2004_p4 = scmp.lt.u32.totalorder %s2002_s16, %s1998_s13  ;;  %p2006_p7 = scmp.lt.u32.totalorder %s1998_s13, %s2609_s17 }
 0x2da   : > { %p2000_p8 = pnand %p1999_p5, %p2709_p12 }
 0x2db   : > { %p2005_p6 = por %p2004_p4, %p2003_p2 }
 0x2dc   : > { %p2001_p10 = pneg %p2000_p8 }
 0x2dd   : > { %p2007_p13 = por %p2006_p7, %p2005_p6 }
 0x2df   : > { %p2008_p1 = pnand %p2007_p13, %p2001_p10 }
 0x2e1   : > { %2011 = shalt.err (!%p2008_p1)
}
 0x2e2   : > { %1851 = dma.vmem_to_hbm [thread:$0]  (%p2709_p12), %s2611_s28, 128, %s2609_s17, %s1242_s18  }
 0x2e3 PF: > { %s1267_s20 = sand.u32 1, %s2052_s26   ;;  %p2710_p11 = scmp.ne.s32.totalorder %s2685_s22, 0 }
 0x2e4   : > { %p2711_p9 = scmp.ge.s32.totalorder %s2076_s7, 2  ;;  %s1268_s12 = scalar_lea.sflag [#allocation6], %s1267_s20 }
 0x2e6   : > { %p1860_p0 = pnand %p2711_p9, %p2710_p11 }
 0x2e8   : > { %2047 = dma.done.wait (!%p1860_p0), %s1268_s12, 128  }
 0x2e9   : > { %2049 = vsyncadd (!%p1860_p0), %s1268_s12, 4294967168  ;;  %s2712_s21 = sld [smem:[#allocation13_spill]]  ;;  %p25_p12 = scmp.ge.s32.totalorder %s2173_s10, 4  }
 0x2ea   : > { %s2713_s26 = smov %s2056_s0  ;;  %s2714_s0 = smov %s2060_s27 }
 0x2eb   : > { %s2715_s27 = smov %s2200_s19  ;;  %s2716_s28 = smov %s2068_s29 }
 0x2ec   : > { %s2717_s29 = smov %s2072_s30  ;;  %s2719_s7 = smov %s2173_s10 }
 0x2ed   :  { %27 = sbr.rel (!%p25_p12) target bundleno = 22 (0x16), region = 94 }
 0x2ef   : > { %s2718_s30 = smov %s2712_s21 }
 0x2f4   :  { %1273 = vsyncpa [#allocation5], 1 }
 0x2f5   :  { %1275 = vsyncpa [#allocation5 + $0x1], 1 }
 0x2f6   :  { %1276 = vsyncpa [#allocation6], 1 }
 0x2f7   :  { %1278 = vsyncpa [#allocation6 + $0x1], 1 }

</bundles_post_ra>
